<compile_context>
chip_gen: v6e
topology: v6e:2x2x1
jax: 0.10.0
libtpu: 0.0.40
codegen_flags: <defaults>
</compile_context>

<pallas_src>
import jax
import jax.numpy as jnp
from jax.experimental import pallas as pl
from jax.experimental.pallas import tpu as pltpu


# ---------------------------------------------------------------------------
# Kernel body
# ---------------------------------------------------------------------------
def _identity_copy_kernel(x_ref, o_ref):
    # Pure pass-through: copy the current VMEM tile.
    o_ref[...] = x_ref[...]


# ---------------------------------------------------------------------------
# Tiling / layout policy
# ---------------------------------------------------------------------------
_SMALL_FAST_PATH_BYTES = 256 * 1024      # below this, just return x
_TARGET_BLOCK_BYTES = 2 * 1024 * 1024    # ~2 MiB per block; in+out double-
                                         # buffered -> ~8 MiB VMEM, safe on
                                         # v5e / v6e / v7x alike
_LANE_DENSE_WIDTHS = (8192, 4096, 2048, 1024, 512, 256, 128)


def _pick_2d_view(total, last_dim):
    """Choose (rows, cols) with cols a large multiple of 128 when possible."""
    for c in _LANE_DENSE_WIDTHS:
        if total % c == 0:
            return total // c, c
    # Fallback: natural trailing dim, then a single wide row.
    if last_dim is not None and last_dim > 0 and total % last_dim == 0:
        return total // last_dim, last_dim
    return 1, total


def _pick_row_tile(rows, cols, itemsize):
    """Largest row tile (multiple of 8 sublanes) within the byte budget."""
    bytes_per_row = cols * itemsize
    tr = max(1, _TARGET_BLOCK_BYTES // bytes_per_row)
    if tr >= rows:
        return rows                       # single full-extent block
    tr = max(8, (tr // 8) * 8)            # keep sublane (8) alignment
    return min(tr, rows)


def _identity_copy_2d(x2):
    r, c = x2.shape
    tr = _pick_row_tile(r, c, x2.dtype.itemsize)
    grid = (pl.cdiv(r, tr),)
    return pl.pallas_call(
        _identity_copy_kernel,
        out_shape=jax.ShapeDtypeStruct((r, c), x2.dtype),
        grid_spec=pltpu.PrefetchScalarGridSpec(
            num_scalar_prefetch=0,
            grid=grid,
            in_specs=[pl.BlockSpec((tr, c), lambda i: (i, 0))],
            out_specs=pl.BlockSpec((tr, c), lambda i: (i, 0)),
        ),
        # Output aliases the input: with a donated input this becomes an
        # in-place no-op instead of a full HBM read+write round trip.
        input_output_aliases={0: 0},
        compiler_params=pltpu.CompilerParams(
            # Parallel row axis -> shards across the 2 TensorCores on v7x;
            # harmless no-op on the single-TC v5e/v6e.
            dimension_semantics=("parallel",),
            vmem_limit_bytes=32 * 1024 * 1024,
        ),
    )(x2)


# ---------------------------------------------------------------------------
# Module-equivalent wrappers
# ---------------------------------------------------------------------------
def identity_first_stage_forward(x, *args, force_kernel=False, **kwargs):
    """Pallas equivalent of IdentityFirstStage.forward(x) -> x."""
    orig_shape = x.shape
    orig_dtype = x.dtype
    total = int(x.size)
    itemsize = jnp.dtype(orig_dtype).itemsize
    nbytes = total * itemsize

    # Fast path: identity is a no-op; for tiny inputs the kernel launch and
    # pipeline prologue/epilogue dwarf the copy itself.
    if total == 0 or x.ndim == 0 or (not force_kernel
                                     and nbytes < _SMALL_FAST_PATH_BYTES):
        return x

    # Pack sub-32-bit dtypes (bf16 / fp16 / int8 / fp8) into uint32 words so
    # every load/store moves 32 bits per lane.
    packed = itemsize < 4 and (total * itemsize) % 4 == 0
    if packed:
        ratio = 4 // itemsize
        x_work = jax.lax.bitcast_convert_type(
            x.reshape(total // ratio, ratio), jnp.uint32)
        work_total = total // ratio
        last_dim = None
    else:
        x_work = x.reshape(-1)
        work_total = total
        last_dim = orig_shape[-1]

    r, c = _pick_2d_view(work_total, last_dim)
    out2 = _identity_copy_2d(x_work.reshape(r, c))

    if packed:
        out = jax.lax.bitcast_convert_type(
            out2.reshape(work_total), orig_dtype).reshape(orig_shape)
    else:
        out = out2.reshape(orig_shape)
    return out


def identity_first_stage_encode(x, *args, **kwargs):
    return identity_first_stage_forward(x)


def identity_first_stage_decode(x, *args, **kwargs):
    return identity_first_stage_forward(x)


def identity_first_stage_quantize(x, *args, vq_interface=False, **kwargs):
    y = identity_first_stage_forward(x)
    if vq_interface:
        return (y, None, [None, None, None])
    return y


class IdentityFirstStage:
    """Thin object wrapper mirroring the PyTorch module interface."""

    def __init__(self, *args, vq_interface=False, **kwargs):
        self.vq_interface = vq_interface

    def encode(self, x, *args, **kwargs):
        return identity_first_stage_forward(x)

    def decode(self, x, *args, **kwargs):
        return identity_first_stage_forward(x)

    def quantize(self, x, *args, **kwargs):
        return identity_first_stage_quantize(x, vq_interface=self.vq_interface)

    def __call__(self, x, *args, **kwargs):
        return identity_first_stage_forward(x)


# ---------------------------------------------------------------------------
# Self-test
# ---------------------------------------------------------------------------
if __name__ == "__main__":
    key = jax.random.PRNGKey(0)
    k0, k1, k2 = jax.random.split(key, 3)

    # Small NCHW input consistent with a first-stage image tensor.
    x = jax.random.normal(k0, (2, 4, 16, 16), dtype=jnp.float32)

    # 1) Module forward (fast path: returns x untouched).
    y = jax.block_until_ready(identity_first_stage_forward(x))
    assert y.shape == x.shape and y.dtype == x.dtype
    assert bool(jnp.all(y == x)), "identity forward mismatch (fast path)"

    # 2) Force the Pallas copy kernel on the same small input (f32 path).
    yk = jax.block_until_ready(identity_first_stage_forward(x, force_kernel=True))
    assert yk.shape == x.shape and yk.dtype == x.dtype
    assert bool(jnp.all(yk == x)), "identity forward mismatch (f32 kernel path)"

    # 3) Force the kernel on a bf16 input to exercise the uint32-packed path.
    xb = jax.random.normal(k1, (2, 4, 16, 16), dtype=jnp.bfloat16)
    yb = jax.block_until_ready(identity_first_stage_forward(xb, force_kernel=True))
    assert yb.shape == xb.shape and yb.dtype == xb.dtype
    assert bool(jnp.all(yb == xb)), "identity forward mismatch (bf16 kernel path)"

    # 4) A larger input that takes the tiled multi-block kernel path naturally.
    xl = jax.random.normal(k2, (8, 8, 128, 128), dtype=jnp.float32)  # 4 MiB
    yl = jax.block_until_ready(identity_first_stage_forward(xl))
    assert yl.shape == xl.shape and yl.dtype == xl.dtype
    assert bool(jnp.all(yl == xl)), "identity forward mismatch (tiled kernel path)"

    # 5) vq_interface branch of quantize.
    yq, _, extras = identity_first_stage_quantize(x, vq_interface=True)
    jax.block_until_ready(yq)
    assert bool(jnp.all(yq == x))
    assert extras == [None, None, None]

    print("KERNEL_OK")
</pallas_src>

<mosaic_0001>
module attributes {stable_mosaic.version = 11 : i64} {
  func.func @_identity_copy_kernel(%arg0: i32, %arg1: memref<1x2048xf32, #tpu.memory_space<vmem>>, %arg2: memref<1x2048xf32, #tpu.memory_space<vmem>>) attributes {dimension_semantics = [#tpu.dimension_semantics<parallel>], iteration_bounds = array<i64: 1>, scalar_prefetch = 0 : i64, scratch_operands = 0 : i64, tpu.core_type = #tpu.core_type<tc>, window_params = [{transform_indices = @transform_0, window_bounds = array<i64: 1, 2048>}, {transform_indices = @transform_1, window_bounds = array<i64: 1, 2048>}]} {
    %c0 = arith.constant 0 : index
    %c0_0 = arith.constant 0 : index
    %0 = vector.load %arg1[%c0, %c0_0] : memref<1x2048xf32, #tpu.memory_space<vmem>>, vector<1x2048xf32>
    %c0_1 = arith.constant 0 : index
    %c0_2 = arith.constant 0 : index
    %1 = vector.load %arg2[%c0_1, %c0_2] : memref<1x2048xf32, #tpu.memory_space<vmem>>, vector<1x2048xf32>
    tpu.vector_store %arg2[%c0_1, %c0_2], %0 {strides = array<i32>} : memref<1x2048xf32, #tpu.memory_space<vmem>>, vector<1x2048xf32>,
    return
  }
  func.func @transform_0(%arg0: i32) -> (i32, i32) {
    %c0_i32 = arith.constant 0 : i32
    %c0_i32_0 = arith.constant 0 : i32
    return %arg0, %c0_i32 : i32, i32
  }
  func.func @transform_1(%arg0: i32) -> (i32, i32) {
    %c0_i32 = arith.constant 0 : i32
    %c0_i32_0 = arith.constant 0 : i32
    return %arg0, %c0_i32 : i32, i32
  }
}

</mosaic_0001>

<bundles_post_ra>
// kernel: tpu_custom_call.1
= control target key start
LH: loop header
LB: loop body
LE: loop exit
PB: predicated region body
PF: predicated region fallthrough
CT: control target
= control target key end

     0   :  { %6 = vsyncpa [#allocation3], 0  ;;  %s104_s0 = inlined_call_operand.hbm [shape: f32[1,2048], index: 0, kind: input, shape index: {}, may-alias: {0,1}]   ;;  %s105_s1 = inlined_call_operand.hbm [shape: f32[1,2048], index: 1, kind: output, shape index: {}, may-alias: {0,1}]  }
   0x1   :  { %7 = vsyncpa [#allocation4], 0  ;;  %s86_s6 = smov [#allocation2]  }
   0x2   :  { %s14_s7 = sshll.u32 %s86_s6, 4  ;;  %s15_s7 = int_to_ptr.vmem [resolvable:$true] %s14_s7 }
   0x3   :  { %s50_s8 = scalar_lea.vmem %s15_s7, 256  ;;  %p55_p1 = scmp.lt.s32.totalorder %s15_s7, %s15_s7 }
   0x4   :  { %p51_p0 = scmp.ne.s32.totalorder %s15_s7, %s50_s8  ;;  %p56_p2 = scmp.lt.s32.totalorder %s50_s8, %s50_s8 }
   0x6   :  { %p57_p3 = por %p56_p2, %p55_p1 }
   0x8   :  { %p58_p4 = pnand %p57_p3, %p51_p0 }
   0xa   :  { %61 = shalt.err (!%p58_p4)
}
   0xb   :  { %17 = dma.hbm_to_vmem [thread:$0]  %s104_s0, 256, %s15_s7, [#allocation3]  }
   0xc   :  { %82 = dma.done.wait [#allocation3], 256  }
   0xd   :  { %83 = vsyncadd [#allocation3], 4294967040  ;;  %s87_s11 = smov [#allocation5]   ;;  %v21_v0 = vld [vmem:[#allocation2] sm:$0xff]  ;;  %v22_v1 = vld [vmem:[#allocation2 + $0x8] sm:$0xff] }
   0xe   :  { %s31_s12 = sshll.u32 %s87_s11, 4  ;;  %23 = vst [vmem:[#allocation5] sm:$0xff] %v21_v0  ;;  %24 = vst [vmem:[#allocation5 + $0x8] sm:$0xff] %v22_v1  ;;  %s32_s12 = int_to_ptr.vmem [resolvable:$true] %s31_s12 }
   0xf   :  { %s62_s13 = scalar_lea.vmem %s32_s12, 256  ;;  %p67_p6 = scmp.lt.s32.totalorder %s32_s12, %s32_s12 }
  0x10   :  { %p63_p5 = scmp.ne.s32.totalorder %s32_s12, %s62_s13  ;;  %p68_p7 = scmp.lt.s32.totalorder %s62_s13, %s62_s13 }
  0x12   :  { %p69_p8 = por %p68_p7, %p67_p6 }
  0x14   :  { %p70_p9 = pnand %p69_p8, %p63_p5 }
  0x16   :  { %73 = shalt.err (!%p70_p9)
}
  0x17   :  { %34 = dma.vmem_to_hbm [thread:$0]  %s32_s12, 256, %s105_s1, [#allocation4]  }
  0x18   :  { %84 = dma.done.wait [#allocation4], 256  }
  0x19   :  { %85 = vsyncadd [#allocation4], 4294967040 }
  0x1a   :  { %38 = vsyncpa [#allocation3], 1 }
  0x1b   :  { %39 = vsyncpa [#allocation4], 1 }

</bundles_post_ra>
